<compile_context>
chip_gen: v6e
topology: v6e:2x2x1
jax: 0.10.0
libtpu: 0.0.40
codegen_flags: <defaults>
</compile_context>

<pallas_src>
import jax
import jax.numpy as jnp
from jax.experimental import pallas as pl
from jax.experimental.pallas import tpu as pltpu

_TARGET_BLOCK_BYTES = 6 * 1024 * 1024    # ~6 MiB per block (perf review)
_VMEM_LIMIT_BYTES = 32 * 1024 * 1024     # 4 x 6 MiB double-buffered in+out fits


def _copy_kernel(x_ref, o_ref):
    # Tiled path: the input block already excludes (almost all of) the tail;
    # partial edge blocks are masked by Pallas on writeback.
    o_ref[...] = x_ref[...]


def _slice_kernel(x_ref, o_ref):
    # Tiny-length fallback (l_out < 128): full rows loaded, static slice.
    l_out = o_ref.shape[-1]
    o_ref[...] = x_ref[:, :l_out]


def _round_up(x: int, m: int) -> int:
    return -(-x // m) * m


def _sublane(itemsize: int) -> int:
    # Packed sublane multiple per dtype width (f32:8, bf16/f16:16, int8/fp8:32).
    return {1: 32, 2: 16, 4: 8}[itemsize]


def _pick_len_block(l_out: int, itemsize: int, sublane: int, target: int) -> int:
    """Widest multiple-of-128 length block <= l_out whose minimal strip fits `target`."""
    max_by_target = max(128, (target // (itemsize * sublane)) // 128 * 128)
    return max(128, min(max_by_target, (l_out // 128) * 128))


def _pick_row_block(rows: int, row_bytes: int, sublane: int, target: int) -> int:
    """Rows per block: multiple of the sublane packing, or the full row count."""
    rb = (target // max(row_bytes, 1)) // sublane * sublane
    rb = max(rb, sublane)
    return rows if rb >= rows else rb


def _split_rows_for_megacore(rows: int, rb: int, sublane: int, grid_cols: int) -> int:
    """Ensure the 'parallel' grid has >= 2 blocks so the v7x megacore can shard it."""
    if grid_cols >= 2 or rows <= sublane:
        return rb
    if pl.cdiv(rows, rb) >= 2:
        return rb
    half = max(sublane, _round_up(pl.cdiv(rows, 2), sublane))
    return min(rb, half)


def chomp1d(x: jax.Array, chomp_size: int) -> jax.Array:
    """Pallas implementation of Chomp1d.forward: x[:, :, :-chomp_size]."""
    assert chomp_size >= 0, "chomp_size must be non-negative"
    if chomp_size == 0:
        # Callers that pass 0 (padding=0) mean "no chomp"; return x unchanged
        # rather than PyTorch's degenerate empty `:-0` slice.
        return x

    n, c, l = x.shape
    l_out = l - chomp_size
    assert l_out > 0, "chomp_size must be smaller than the length dimension"

    itemsize = jnp.dtype(x.dtype).itemsize
    assert itemsize in (1, 2, 4), f"unsupported dtype {x.dtype} for TPU sublane packing"
    sublane = _sublane(itemsize)

    rows = n * c
    x2 = x.reshape(rows, l)  # zero-cost: contiguous (N, C, L) row-major layout

    if l_out >= 128:
        # Unified tiled-copy path (aligned or ragged l_out): partial trailing
        # blocks are masked; tail reads are limited to < one lane block.
        lb = _pick_len_block(l_out, itemsize, sublane, _TARGET_BLOCK_BYTES)
        grid_cols = pl.cdiv(l_out, lb)
        rb = _pick_row_block(rows, lb * itemsize, sublane, _TARGET_BLOCK_BYTES)
        rb = _split_rows_for_megacore(rows, rb, sublane, grid_cols)
        grid = (pl.cdiv(rows, rb), grid_cols)
        kernel = _copy_kernel
        in_spec = pl.BlockSpec((rb, lb), lambda i, j: (i, j))
        out_spec = pl.BlockSpec((rb, lb), lambda i, j: (i, j))
        dim_sem = ("parallel", "parallel")
        bytes_accessed = 2 * rows * l_out * itemsize
    else:
        # l_out < 128: no 128-wide tile exists; read whole (tiny) rows and
        # slice in-kernel.  Latency-trivial at these sizes.
        rb = _pick_row_block(rows, l * itemsize, sublane, _TARGET_BLOCK_BYTES)
        rb = _split_rows_for_megacore(rows, rb, sublane, 1)
        grid = (pl.cdiv(rows, rb),)
        kernel = _slice_kernel
        in_spec = pl.BlockSpec((rb, l), lambda i: (i, 0))
        out_spec = pl.BlockSpec((rb, l_out), lambda i: (i, 0))
        dim_sem = ("parallel",)
        bytes_accessed = rows * (l + l_out) * itemsize

    out2 = pl.pallas_call(
        kernel,
        out_shape=jax.ShapeDtypeStruct((rows, l_out), x.dtype),
        grid_spec=pltpu.PrefetchScalarGridSpec(
            num_scalar_prefetch=0,
            grid=grid,
            in_specs=[in_spec],
            out_specs=out_spec,
        ),
        compiler_params=pltpu.CompilerParams(
            dimension_semantics=dim_sem,
            vmem_limit_bytes=_VMEM_LIMIT_BYTES,
        ),
        cost_estimate=pl.CostEstimate(
            flops=0, transcendentals=0, bytes_accessed=bytes_accessed),
    )(x2)

    return out2.reshape(n, c, l_out)


if __name__ == "__main__":
    k1, k2, k3, k4 = jax.random.split(jax.random.PRNGKey(0), 4)

    # Case 1: tiny ragged case matching the module's NCL convention
    # (batch=2, channels=4, length=16, chomp=4) -> l_out=12 < 128 fallback path.
    x_small = jax.random.normal(k1, (2, 4, 16), dtype=jnp.float32)
    out_small = jax.block_until_ready(chomp1d(x_small, 4))
    assert out_small.shape == (2, 4, 12), out_small.shape
    assert out_small.dtype == x_small.dtype
    assert jnp.array_equal(out_small, x_small[:, :, :-4]), "small-path mismatch"

    # Case 2: lane-aligned case (l_out = 256) -> tiled path; rows split into
    # two blocks so the v7x megacore has work on both TensorCores.
    x_big = jax.random.normal(k2, (2, 8, 384), dtype=jnp.float32)
    out_big = jax.block_until_ready(chomp1d(x_big, 128))
    assert out_big.shape == (2, 8, 256), out_big.shape
    assert jnp.array_equal(out_big, x_big[:, :, :-128]), "aligned-path mismatch"

    # Case 3: ragged but >= 128 (l_out = 250) -> unified tiled path with a
    # masked partial last column block (no full-row reads).
    x_rag = jax.random.normal(k3, (2, 8, 300), dtype=jnp.float32)
    out_rag = jax.block_until_ready(chomp1d(x_rag, 50))
    assert out_rag.shape == (2, 8, 250), out_rag.shape
    assert jnp.array_equal(out_rag, x_rag[:, :, :-50]), "ragged-tiled mismatch"

    # Case 4: bf16 (sublane packing 16), aligned l_out = 512.
    x_bf = jax.random.normal(k4, (1, 16, 640), dtype=jnp.bfloat16)
    out_bf = jax.block_until_ready(chomp1d(x_bf, 128))
    assert out_bf.shape == (1, 16, 512), out_bf.shape
    assert out_bf.dtype == jnp.bfloat16
    assert jnp.array_equal(out_bf, x_bf[:, :, :-128]), "bf16-path mismatch"

    print("KERNEL_OK")
</pallas_src>

<mosaic_0001>
module attributes {stable_mosaic.version = 11 : i64} {
  func.func @_slice_kernel(%arg0: i32, %arg1: memref<8x16xf32, #tpu.memory_space<vmem>>, %arg2: memref<8x12xf32, #tpu.memory_space<vmem>>) attributes {dimension_semantics = [#tpu.dimension_semantics<parallel>], iteration_bounds = array<i64: 1>, scalar_prefetch = 0 : i64, scratch_operands = 0 : i64, tpu.core_type = #tpu.core_type<tc>, window_params = [{transform_indices = @transform_0, window_bounds = array<i64: 8, 16>}, {transform_indices = @transform_1, window_bounds = array<i64: 8, 12>}]} {
    %c0 = arith.constant 0 : index
    %c0_0 = arith.constant 0 : index
    %0 = vector.load %arg1[%c0, %c0_0] : memref<8x16xf32, #tpu.memory_space<vmem>>, vector<8x12xf32>
    %c0_1 = arith.constant 0 : index
    %c0_2 = arith.constant 0 : index
    %1 = vector.load %arg2[%c0_1, %c0_2] : memref<8x12xf32, #tpu.memory_space<vmem>>, vector<8x12xf32>
    tpu.vector_store %arg2[%c0_1, %c0_2], %0 {strides = array<i32>} : memref<8x12xf32, #tpu.memory_space<vmem>>, vector<8x12xf32>,
    return
  }
  func.func @transform_0(%arg0: i32) -> (i32, i32) {
    %c0_i32 = arith.constant 0 : i32
    %c0_i32_0 = arith.constant 0 : i32
    return %arg0, %c0_i32 : i32, i32
  }
  func.func @transform_1(%arg0: i32) -> (i32, i32) {
    %c0_i32 = arith.constant 0 : i32
    %c0_i32_0 = arith.constant 0 : i32
    return %arg0, %c0_i32 : i32, i32
  }
}

</mosaic_0001>

<bundles_post_ra>
// kernel: tpu_custom_call.1
= control target key start
LH: loop header
LB: loop body
LE: loop exit
PB: predicated region body
PF: predicated region fallthrough
CT: control target
= control target key end

     0   :  { %6 = vsyncpa [#allocation3], 0  ;;  %s103_s0 = inlined_call_operand.hbm [shape: f32[8,16], index: 0, kind: input, shape index: {}]   ;;  %s104_s1 = inlined_call_operand.hbm [shape: f32[8,12], index: 1, kind: output, shape index: {}]  }
   0x1   :  { %7 = vsyncpa [#allocation4], 0  ;;  %s85_s6 = smov [#allocation2]  }
   0x2   :  { %s14_s7 = sshll.u32 %s85_s6, 4  ;;  %s15_s7 = int_to_ptr.vmem [resolvable:$true] %s14_s7 }
   0x3   :  { %s49_s8 = scalar_lea.vmem %s15_s7, 128  ;;  %p54_p1 = scmp.lt.s32.totalorder %s15_s7, %s15_s7 }
   0x4   :  { %p50_p0 = scmp.ne.s32.totalorder %s15_s7, %s49_s8  ;;  %p55_p2 = scmp.lt.s32.totalorder %s49_s8, %s49_s8 }
   0x6   :  { %p56_p3 = por %p55_p2, %p54_p1 }
   0x8   :  { %p57_p4 = pnand %p56_p3, %p50_p0 }
   0xa   :  { %60 = shalt.err (!%p57_p4)
}
   0xb   :  { %17 = dma.hbm_to_vmem [thread:$0]  %s103_s0, 128, %s15_s7, [#allocation3]  }
   0xc   :  { %81 = dma.done.wait [#allocation3], 128  }
   0xd   :  { %82 = vsyncadd [#allocation3], 4294967168  ;;  %s86_s11 = smov [#allocation5]   ;;  %vm22_vm0 = vcmask 97280   ;;  %v21_v0 = vld [vmem:[#allocation2] sm:$0xff] }
   0xe   :  { %s30_s12 = sshll.u32 %s86_s11, 4  ;;  %23 = vst.msk [vmem:[#allocation5] sm:$0xff] %vm22_vm0, %v21_v0  ;;  %s31_s12 = int_to_ptr.vmem [resolvable:$true] %s30_s12 }
   0xf   :  { %s61_s13 = scalar_lea.vmem %s31_s12, 128  ;;  %p66_p6 = scmp.lt.s32.totalorder %s31_s12, %s31_s12 }
  0x10   :  { %p62_p5 = scmp.ne.s32.totalorder %s31_s12, %s61_s13  ;;  %p67_p7 = scmp.lt.s32.totalorder %s61_s13, %s61_s13 }
  0x12   :  { %p68_p8 = por %p67_p7, %p66_p6 }
  0x14   :  { %p69_p9 = pnand %p68_p8, %p62_p5 }
  0x16   :  { %72 = shalt.err (!%p69_p9)
}
  0x17   :  { %33 = dma.vmem_to_hbm [thread:$0]  %s31_s12, 128, %s104_s1, [#allocation4]  }
  0x18   :  { %83 = dma.done.wait [#allocation4], 128  }
  0x19   :  { %84 = vsyncadd [#allocation4], 4294967168 }
  0x1a   :  { %37 = vsyncpa [#allocation3], 1 }
  0x1b   :  { %38 = vsyncpa [#allocation4], 1 }

</bundles_post_ra>
